<compile_context>
chip_gen: v7x
topology: tpu7x:2x2x1
jax: 0.10.0
libtpu: 0.0.40
codegen_flags: <defaults>
</compile_context>

<pallas_src>
import math

import jax
import jax.numpy as jnp
from jax.experimental import pallas as pl
from jax.experimental.pallas import tpu as pltpu

LANE = 128     # vreg lane width  -> feature dims padded to multiples of this
SUBLANE = 8    # vreg sublane     -> f32 row alignment (16 for 2-byte dtypes)


def _round_up(v, m):
    return ((v + m - 1) // m) * m


def _pick_div_tile(dim, max_tile, align):
    """Largest multiple of `align` <= max_tile that divides `dim` (dim % align == 0)."""
    t = min(max_tile, dim)
    t = max(align, (t // align) * align)
    while dim % t:
        t -= align
    return t


# ---------------------------------------------------------------------------
# Pallas kernels: tiled, pipelined  y = x @ Wt + b
# ---------------------------------------------------------------------------
def _linear_kernel_single(x_ref, wt_ref, b_ref, o_ref):
    # K fits in one tile: single MXU pass (bf16 x bf16 -> f32), f32 bias add,
    # one lane-dense store (tn % 128 == 0).
    o_ref[...] = (jnp.dot(x_ref[...], wt_ref[...], preferred_element_type=jnp.float32)
                  + b_ref[...]).astype(o_ref.dtype)


def _linear_kernel_acc_out(x_ref, wt_ref, b_ref, o_ref):
    # nk > 1, f32 output: o_ref's block index is invariant in k, so it is
    # VMEM-resident across the reduction -> accumulate directly, no scratch.
    k = pl.program_id(2)

    @pl.when(k == 0)
    def _init():
        o_ref[...] = jnp.zeros_like(o_ref)

    o_ref[...] += jnp.dot(x_ref[...], wt_ref[...], preferred_element_type=jnp.float32)

    @pl.when(k == pl.num_programs(2) - 1)
    def _finalize():
        o_ref[...] += b_ref[...]


def _linear_kernel_acc_scratch(x_ref, wt_ref, b_ref, o_ref, acc_ref):
    # nk > 1, non-f32 output: accumulate in an f32 scratch, cast once at the end.
    k = pl.program_id(2)

    @pl.when(k == 0)
    def _init():
        acc_ref[...] = jnp.zeros_like(acc_ref)

    acc_ref[...] += jnp.dot(x_ref[...], wt_ref[...], preferred_element_type=jnp.float32)

    @pl.when(k == pl.num_programs(2) - 1)
    def _finalize():
        o_ref[...] = (acc_ref[...] + b_ref[...]).astype(o_ref.dtype)


def pallas_linear(x, wt_pad, bias_pad, *, out_dtype=jnp.bfloat16,
                  tm_max=256, tn_max=512, tk_max=1024,
                  vmem_limit_bytes=48 * 1024 * 1024):
    """Return x @ wt_pad + bias_pad as a lane-dense padded [M_pad, N_pad] array.

    x        : [M, K_pad]      (cast to wt_pad.dtype; rows zero-padded here)
    wt_pad   : [K_pad, N_pad]  bf16, pre-transposed + zero-padded at init
    bias_pad : [1, N_pad]      f32
    The caller slices to the true (unpadded) widths only at the model outputs.
    """
    M, K_pad = x.shape
    K_pad_w, N_pad = wt_pad.shape
    assert K_pad == K_pad_w and K_pad % LANE == 0 and N_pad % LANE == 0
    assert bias_pad.shape == (1, N_pad)

    if x.dtype != wt_pad.dtype:
        # one fused XLA cast; keeps the MXU path bf16 x bf16 with no in-kernel cast
        x = x.astype(wt_pad.dtype)

    # Divisor-aware M tiling (avoid e.g. M=300 -> M_pad=512 over-padding).
    row_align = 16 if jnp.dtype(x.dtype).itemsize == 2 else SUBLANE
    M_pad = _round_up(M, row_align)
    tm = _pick_div_tile(M_pad, tm_max, row_align)
    # v7x has 2 TensorCores/chip: for non-trivial M make sure the "parallel"
    # i-axis has >= 2 blocks so both cores get work.
    if M_pad // tm < 2 and M_pad >= 512:
        tm = _pick_div_tile(M_pad, M_pad // 2, row_align)
    if M_pad != M:
        x = jnp.pad(x, ((0, M_pad - M), (0, 0)))

    tn = _pick_div_tile(N_pad, tn_max, LANE)
    tk = _pick_div_tile(K_pad, tk_max, LANE)
    grid = (M_pad // tm, N_pad // tn, K_pad // tk)
    nk = grid[2]

    if nk == 1:
        kernel = _linear_kernel_single
        scratch = []
    elif jnp.dtype(out_dtype) == jnp.dtype(jnp.float32):
        kernel = _linear_kernel_acc_out
        scratch = []
    else:
        kernel = _linear_kernel_acc_scratch
        scratch = [pltpu.VMEM((tm, tn), jnp.float32)]

    out = pl.pallas_call(
        kernel,
        out_shape=jax.ShapeDtypeStruct((M_pad, N_pad), out_dtype),
        grid_spec=pltpu.PrefetchScalarGridSpec(
            num_scalar_prefetch=0,
            grid=grid,
            in_specs=[
                pl.BlockSpec((tm, tk), lambda i, j, k: (i, k)),
                pl.BlockSpec((tk, tn), lambda i, j, k: (k, j)),
                pl.BlockSpec((1, tn), lambda i, j, k: (0, j)),   # bias indexed by j only
            ],
            out_specs=pl.BlockSpec((tm, tn), lambda i, j, k: (i, j)),
            scratch_shapes=scratch,
        ),
        compiler_params=pltpu.CompilerParams(
            # i/j shard across TensorCores; k is the trailing reduction axis.
            dimension_semantics=("parallel", "parallel", "arbitrary"),
            # 48 MiB is safe on v7x (64 MiB physical) and leaves headroom on
            # v5e/v6e (128 MiB); raise with larger tiles on v6e for big layers.
            vmem_limit_bytes=vmem_limit_bytes,
        ),
    )(x, wt_pad, bias_pad)
    return out


# ---------------------------------------------------------------------------
# Deterministic parameter construction (nn.Linear-style init), pre-transposed,
# zero-padded to lane width and stored in bf16.
# ---------------------------------------------------------------------------
def _linear_params_padded(key, out_dim, in_dim, *, use_bias=True):
    k_pad, n_pad = _round_up(in_dim, LANE), _round_up(out_dim, LANE)
    kw, kb = jax.random.split(key)
    bound = 1.0 / math.sqrt(in_dim)
    w = jax.random.uniform(kw, (out_dim, in_dim), jnp.float32, -bound, bound)
    wt = jnp.zeros((k_pad, n_pad), jnp.float32).at[:in_dim, :out_dim].set(w.T)
    wt = wt.astype(jnp.bfloat16)
    b = jnp.zeros((1, n_pad), jnp.float32)
    if use_bias:
        b = b.at[0, :out_dim].set(
            jax.random.uniform(kb, (out_dim,), jnp.float32, -bound, bound))
    return wt, b


# ---------------------------------------------------------------------------
# Encoder (with a deterministic CLIP-style stub backbone)
# ---------------------------------------------------------------------------
class EncoderPallas:
    def __init__(self, key, *, vocab_size, text_hidden, image_hidden, proj_dim, patch):
        keys = jax.random.split(key, 7)
        self.patch = patch
        self.text_hidden = text_hidden
        self.image_hidden = image_hidden
        self.proj_dim = proj_dim
        self.h_text_pad = _round_up(text_hidden, LANE)
        self.h_img_pad = _round_up(image_hidden, LANE)
        self.proj_pad = _round_up(proj_dim, LANE)
        self.patch_in = 3 * patch * patch
        self.patch_in_pad = _round_up(self.patch_in, LANE)

        # --- CLIP-stub parameters (deterministic, synthetic backbone) ---
        emb = 0.02 * jax.random.normal(keys[0], (vocab_size, text_hidden), jnp.float32)
        self.token_embed = jnp.zeros((vocab_size, self.h_text_pad),
                                     jnp.float32).at[:, :text_hidden].set(emb)
        self.patch_embed_wt, self.patch_embed_b = _linear_params_padded(
            keys[1], image_hidden, self.patch_in)
        cls = 0.02 * jax.random.normal(keys[2], (image_hidden,), jnp.float32)
        self.cls_embed = jnp.zeros((self.h_img_pad,), jnp.float32).at[:image_hidden].set(cls)

        # CLIP projection heads (no bias, like CLIPModel).
        self.text_proj_wt, _ = _linear_params_padded(keys[3], proj_dim, text_hidden,
                                                     use_bias=False)
        self.visual_proj_wt, _ = _linear_params_padded(keys[4], proj_dim, image_hidden,
                                                       use_bias=False)

        # --- Encoder's own layers (match the PyTorch module) ---
        self.text_fc_wt, self.text_fc_b = _linear_params_padded(keys[5], text_hidden, text_hidden)
        self.image_fc_wt, self.image_fc_b = _linear_params_padded(keys[6], text_hidden, image_hidden)

        # --- Fused block-diagonal weight for "launch A":
        #       text_tokens_fc + patch embedding + both projection heads.
        #     K slices: text_fc in | patch-embed in | text-proj in | visual-proj in
        #     N slices: text_fc out | patch-embed out | projection out (shared)
        kA0 = 0
        kA1 = kA0 + self.h_text_pad
        kA2 = kA1 + self.patch_in_pad
        kA3 = kA2 + self.h_text_pad
        kA_total = kA3 + self.h_img_pad
        nA0 = 0
        nA1 = nA0 + self.h_text_pad
        nA2 = nA1 + self.h_img_pad
        nA_total = nA2 + self.proj_pad
        wA = jnp.zeros((kA_total, nA_total), jnp.bfloat16)
        wA = wA.at[kA0:kA0 + self.h_text_pad, nA0:nA0 + self.h_text_pad].set(self.text_fc_wt)
        wA = wA.at[kA1:kA1 + self.patch_in_pad, nA1:nA1 + self.h_img_pad].set(self.patch_embed_wt)
        wA = wA.at[kA2:kA2 + self.h_text_pad, nA2:nA2 + self.proj_pad].set(self.text_proj_wt)
        wA = wA.at[kA3:kA3 + self.h_img_pad, nA2:nA2 + self.proj_pad].set(self.visual_proj_wt)
        bA = jnp.zeros((1, nA_total), jnp.float32)
        bA = bA.at[:, nA0:nA0 + self.h_text_pad].set(self.text_fc_b)
        bA = bA.at[:, nA1:nA1 + self.h_img_pad].set(self.patch_embed_b)
        self.fused_wt, self.fused_b = wA, bA
        self.kA = (kA0, kA1, kA2, kA3, kA_total)
        self.nA = (nA0, nA1, nA2, nA_total)

    def __call__(self, input_ids=None, attention_mask=None, token_type_ids=None,
                 pixel_values=None):
        B, Lt = input_ids.shape
        _, C, Hpix, Wpix = pixel_values.shape
        p = self.patch
        nh, nw = Hpix // p, Wpix // p
        n_patch = nh * nw
        kA0, kA1, kA2, kA3, kA_total = self.kA
        nA0, nA1, nA2, nA_total = self.nA

        # ---- CLIP stub, text side: embedding lookup + tanh (once, in XLA), then mask.
        #      tanh-then-mask matches the reference ordering for any mask dtype.
        # TODO(synk): stands in for the pretrained CLIP text transformer.
        emb = self.token_embed[input_ids]                                   # [B, Lt, Htp]
        emb_act = jnp.tanh(emb) * attention_mask[..., None].astype(emb.dtype)
        text_rows = emb_act.reshape(B * Lt, self.h_text_pad)

        # ---- CLIP stub, image side prologue: NCHW -> flattened patches ----
        patches = pixel_values.reshape(B, C, nh, p, nw, p).transpose(0, 2, 4, 1, 3, 5)
        patches = patches.reshape(B * n_patch, self.patch_in)               # [B*np, 48]

        # pooled vectors (stub: last text position / CLS token)
        # TODO(synk): CLIP uses EOS/argmax text pooling; the stub pools the last position.
        text_pooled = emb_act[:, -1, :]                                     # [B, Htp]
        image_pooled = jnp.broadcast_to(self.cls_embed[None, :], (B, self.h_img_pad))

        # ---- Launch A: ONE block-diagonal bf16 Pallas matmul for
        #      text_tokens_fc + patch embedding + both CLIP projection heads ----
        m_text = B * Lt
        m_patch = B * n_patch
        mA = m_text + m_patch + 2 * B
        xA = jnp.zeros((mA, kA_total), jnp.bfloat16)
        xA = xA.at[:m_text, kA0:kA0 + self.h_text_pad].set(text_rows.astype(jnp.bfloat16))
        xA = xA.at[m_text:m_text + m_patch, kA1:kA1 + self.patch_in].set(
            patches.astype(jnp.bfloat16))
        xA = xA.at[m_text + m_patch:m_text + m_patch + B, kA2:kA2 + self.h_text_pad].set(
            text_pooled.astype(jnp.bfloat16))
        xA = xA.at[m_text + m_patch + B:mA, kA3:kA3 + self.h_img_pad].set(
            image_pooled.astype(jnp.bfloat16))

        outA = pallas_linear(xA, self.fused_wt, self.fused_b, out_dtype=jnp.bfloat16)

        text_seq = outA[:m_text, nA0:nA0 + self.h_text_pad]                 # bf16, 128-padded
        patch_tok = outA[m_text:m_text + m_patch, nA1:nA1 + self.h_img_pad]  # bf16, chained
        text_cls_pad = outA[m_text + m_patch:m_text + m_patch + B, nA2:nA2 + self.proj_pad]
        image_cls_pad = outA[m_text + m_patch + B:mA, nA2:nA2 + self.proj_pad]

        # ---- Launch B: image_tokens_fc on [CLS ; patch tokens]
        #      (consumes bf16 patch_tok directly, keeps the 128-padded lane width) ----
        cls_tok = jnp.broadcast_to(self.cls_embed[None, None, :],
                                   (B, 1, self.h_img_pad)).astype(jnp.bfloat16)
        image_hidden_seq = jnp.concatenate(
            [cls_tok, patch_tok.reshape(B, n_patch, self.h_img_pad)], axis=1)
        xB = image_hidden_seq.reshape(B * (1 + n_patch), self.h_img_pad)
        outB = pallas_linear(xB, self.image_fc_wt, self.image_fc_b, out_dtype=jnp.float32)

        # ---- slice to the true (unpadded) model outputs only here ----
        text_seq_tokens = text_seq[:, :self.text_hidden].astype(jnp.float32)
        text_seq_tokens = text_seq_tokens.reshape(B, Lt, self.text_hidden)
        image_patch_tokens = outB[:B * (1 + n_patch), :self.text_hidden]
        image_patch_tokens = image_patch_tokens.reshape(B, 1 + n_patch, self.text_hidden)
        text_cls = text_cls_pad[:, :self.proj_dim].astype(jnp.float32)
        image_cls = image_cls_pad[:, :self.proj_dim].astype(jnp.float32)
        return text_seq_tokens, image_patch_tokens, text_cls, image_cls


# ---------------------------------------------------------------------------
# Demo / smoke test
# ---------------------------------------------------------------------------
if __name__ == "__main__":
    key = jax.random.PRNGKey(0)
    k_params, k_ids, k_pix = jax.random.split(key, 3)

    B = 2                 # batch
    Lt = 8                # text sequence length
    H_TEXT = 32           # args.model.input_hidden_dim
    H_IMG = 64            # args.model.input_image_hidden_dim
    PROJ = 32             # CLIP projection dim
    IMG = 16              # spatial size
    PATCH = 4             # patch size -> 16 patches + 1 CLS = 17 image tokens
    VOCAB = 100

    enc = EncoderPallas(k_params, vocab_size=VOCAB, text_hidden=H_TEXT,
                        image_hidden=H_IMG, proj_dim=PROJ, patch=PATCH)

    input_ids = jax.random.randint(k_ids, (B, Lt), 0, VOCAB, dtype=jnp.int32)
    attention_mask = jnp.ones((B, Lt), dtype=jnp.int32)
    pixel_values = jax.random.normal(k_pix, (B, 3, IMG, IMG), dtype=jnp.float32)  # NCHW

    fwd = jax.jit(lambda ids, m, pix: enc(input_ids=ids, attention_mask=m, pixel_values=pix))
    text_seq_tokens, image_patch_tokens, text_cls, image_cls = fwd(
        input_ids, attention_mask, pixel_values)
    jax.block_until_ready((text_seq_tokens, image_patch_tokens, text_cls, image_cls))

    n_img_tok = 1 + (IMG // PATCH) ** 2
    assert text_seq_tokens.shape == (B, Lt, H_TEXT)
    assert image_patch_tokens.shape == (B, n_img_tok, H_TEXT)
    assert text_cls.shape == (B, PROJ)
    assert image_cls.shape == (B, PROJ)

    # --- Correctness checks against a plain-JAX f32 reference using the stored bf16
    #     weights (only in-kernel bf16 activation/output rounding differs). ---
    mask = attention_mask[..., None].astype(jnp.float32)
    hid_ref = jnp.tanh(enc.token_embed[input_ids][..., :H_TEXT]) * mask          # [B, L, 32]

    # text_tokens_fc
    w_tfc = enc.text_fc_wt[:H_TEXT, :H_TEXT].astype(jnp.float32)
    b_tfc = enc.text_fc_b[0, :H_TEXT]
    ref_text = hid_ref.reshape(B * Lt, H_TEXT) @ w_tfc + b_tfc
    assert jnp.allclose(text_seq_tokens.reshape(B * Lt, H_TEXT), ref_text,
                        atol=2e-2, rtol=2e-2), "text_tokens_fc mismatch"

    # text projection head
    w_tp = enc.text_proj_wt[:H_TEXT, :PROJ].astype(jnp.float32)
    ref_tcls = hid_ref[:, -1, :] @ w_tp
    assert jnp.allclose(text_cls, ref_tcls, atol=2e-2, rtol=2e-2), "text projection mismatch"

    # patch embedding -> image_tokens_fc
    nh = IMG // PATCH
    pats = pixel_values.reshape(B, 3, nh, PATCH, nh, PATCH).transpose(0, 2, 4, 1, 3, 5)
    pats = pats.reshape(B * nh * nh, 3 * PATCH * PATCH)
    w_pe = enc.patch_embed_wt[:3 * PATCH * PATCH, :H_IMG].astype(jnp.float32)
    b_pe = enc.patch_embed_b[0, :H_IMG]
    ref_patch = pats @ w_pe + b_pe                                               # [B*np, 64]
    cls_r = enc.cls_embed[:H_IMG]
    ref_img_hidden = jnp.concatenate(
        [jnp.broadcast_to(cls_r[None, None, :], (B, 1, H_IMG)),
         ref_patch.reshape(B, nh * nh, H_IMG)], axis=1)
    w_ifc = enc.image_fc_wt[:H_IMG, :H_TEXT].astype(jnp.float32)
    b_ifc = enc.image_fc_b[0, :H_TEXT]
    ref_img_tok = ref_img_hidden.reshape(-1, H_IMG) @ w_ifc + b_ifc
    assert jnp.allclose(image_patch_tokens.reshape(-1, H_TEXT), ref_img_tok,
                        atol=3e-2, rtol=3e-2), "image_tokens_fc mismatch"

    # visual projection head
    w_vp = enc.visual_proj_wt[:H_IMG, :PROJ].astype(jnp.float32)
    ref_icls = jnp.broadcast_to(cls_r[None, :], (B, H_IMG)) @ w_vp
    assert jnp.allclose(image_cls, ref_icls, atol=2e-2, rtol=2e-2), "visual projection mismatch"

    print("KERNEL_OK")
</pallas_src>

<mosaic_0001>
module attributes {stable_mosaic.version = 11 : i64} {
  func.func @_linear_kernel_single(%arg0: i32, %arg1: i32, %arg2: i32, %arg3: memref<64x512xbf16, #tpu.memory_space<vmem>>, %arg4: memref<512x384xbf16, #tpu.memory_space<vmem>>, %arg5: memref<1x384xf32, #tpu.memory_space<vmem>>, %arg6: memref<64x384xbf16, #tpu.memory_space<vmem>>) attributes {dimension_semantics = [#tpu.dimension_semantics<parallel>, #tpu.dimension_semantics<parallel>, #tpu.dimension_semantics<arbitrary>], iteration_bounds = array<i64: 1, 1, 1>, scalar_prefetch = 0 : i64, scratch_operands = 0 : i64, tpu.core_type = #tpu.core_type<tc>, window_params = [{transform_indices = @transform_0, window_bounds = array<i64: 64, 512>}, {transform_indices = @transform_1, window_bounds = array<i64: 512, 384>}, {transform_indices = @transform_2, window_bounds = array<i64: 1, 384>}, {transform_indices = @transform_3, window_bounds = array<i64: 64, 384>}]} {
    %c0 = arith.constant 0 : index
    %c0_0 = arith.constant 0 : index
    %0 = vector.load %arg3[%c0, %c0_0] : memref<64x512xbf16, #tpu.memory_space<vmem>>, vector<64x512xbf16>
    %c0_1 = arith.constant 0 : index
    %c0_2 = arith.constant 0 : index
    %1 = vector.load %arg4[%c0_1, %c0_2] : memref<512x384xbf16, #tpu.memory_space<vmem>>, vector<512x384xbf16>
    %cst = arith.constant dense<0.000000e+00> : vector<64x384xf32>
    %2 = tpu.matmul %0, %1, %cst {dimension_numbers = #tpu.dot_dimension_numbers<[1], [0], [0], [1], [0, 0, 1, 1], [], []>} : vector<64x512xbf16>, vector<512x384xbf16>, vector<64x384xf32> -> vector<64x384xf32>
    %c0_3 = arith.constant 0 : index
    %c0_4 = arith.constant 0 : index
    %3 = vector.load %arg5[%c0_3, %c0_4] : memref<1x384xf32, #tpu.memory_space<vmem>>, vector<1x384xf32>
    %4 = vector.broadcast %3 : vector<1x384xf32> to vector<64x384xf32>
    %5 = arith.addf %2, %4 : vector<64x384xf32>
    %6 = arith.truncf %5 : vector<64x384xf32> to vector<64x384xbf16>
    %c0_5 = arith.constant 0 : index
    %c0_6 = arith.constant 0 : index
    %7 = vector.load %arg6[%c0_5, %c0_6] : memref<64x384xbf16, #tpu.memory_space<vmem>>, vector<64x384xbf16>
    tpu.vector_store %arg6[%c0_5, %c0_6], %6 {strides = array<i32>} : memref<64x384xbf16, #tpu.memory_space<vmem>>, vector<64x384xbf16>,
    return
  }
  func.func @transform_0(%arg0: i32, %arg1: i32, %arg2: i32) -> (i32, i32) {
    %c0_i32 = arith.constant 0 : i32
    return %arg0, %arg2 : i32, i32
  }
  func.func @transform_1(%arg0: i32, %arg1: i32, %arg2: i32) -> (i32, i32) {
    %c0_i32 = arith.constant 0 : i32
    return %arg2, %arg1 : i32, i32
  }
  func.func @transform_2(%arg0: i32, %arg1: i32, %arg2: i32) -> (i32, i32) {
    %c0_i32 = arith.constant 0 : i32
    %c0_i32_0 = arith.constant 0 : i32
    return %c0_i32, %arg1 : i32, i32
  }
  func.func @transform_3(%arg0: i32, %arg1: i32, %arg2: i32) -> (i32, i32) {
    %c0_i32 = arith.constant 0 : i32
    return %arg0, %arg1 : i32, i32
  }
}

module attributes {stable_mosaic.version = 11 : i64} {
  func.func @_linear_kernel_single(%arg0: i32, %arg1: i32, %arg2: i32, %arg3: memref<48x128xbf16, #tpu.memory_space<vmem>>, %arg4: memref<128x128xbf16, #tpu.memory_space<vmem>>, %arg5: memref<1x128xf32, #tpu.memory_space<vmem>>, %arg6: memref<48x128xf32, #tpu.memory_space<vmem>>) attributes {dimension_semantics = [#tpu.dimension_semantics<parallel>, #tpu.dimension_semantics<parallel>, #tpu.dimension_semantics<arbitrary>], iteration_bounds = array<i64: 1, 1, 1>, scalar_prefetch = 0 : i64, scratch_operands = 0 : i64, tpu.core_type = #tpu.core_type<tc>, window_params = [{transform_indices = @transform_0, window_bounds = array<i64: 48, 128>}, {transform_indices = @transform_1, window_bounds = array<i64: 128, 128>}, {transform_indices = @transform_2, window_bounds = array<i64: 1, 128>}, {transform_indices = @transform_3, window_bounds = array<i64: 48, 128>}]} {
    %c0 = arith.constant 0 : index
    %c0_0 = arith.constant 0 : index
    %0 = vector.load %arg3[%c0, %c0_0] : memref<48x128xbf16, #tpu.memory_space<vmem>>, vector<48x128xbf16>
    %c0_1 = arith.constant 0 : index
    %c0_2 = arith.constant 0 : index
    %1 = vector.load %arg4[%c0_1, %c0_2] : memref<128x128xbf16, #tpu.memory_space<vmem>>, vector<128x128xbf16>
    %cst = arith.constant dense<0.000000e+00> : vector<48x128xf32>
    %2 = tpu.matmul %0, %1, %cst {dimension_numbers = #tpu.dot_dimension_numbers<[1], [0], [0], [1], [0, 0, 1, 1], [], []>} : vector<48x128xbf16>, vector<128x128xbf16>, vector<48x128xf32> -> vector<48x128xf32>
    %c0_3 = arith.constant 0 : index
    %c0_4 = arith.constant 0 : index
    %3 = vector.load %arg5[%c0_3, %c0_4] : memref<1x128xf32, #tpu.memory_space<vmem>>, vector<1x128xf32>
    %4 = vector.broadcast %3 : vector<1x128xf32> to vector<48x128xf32>
    %5 = arith.addf %2, %4 : vector<48x128xf32>
    %c0_5 = arith.constant 0 : index
    %c0_6 = arith.constant 0 : index
    %6 = vector.load %arg6[%c0_5, %c0_6] : memref<48x128xf32, #tpu.memory_space<vmem>>, vector<48x128xf32>
    tpu.vector_store %arg6[%c0_5, %c0_6], %5 {strides = array<i32>} : memref<48x128xf32, #tpu.memory_space<vmem>>, vector<48x128xf32>,
    return
  }
  func.func @transform_0(%arg0: i32, %arg1: i32, %arg2: i32) -> (i32, i32) {
    %c0_i32 = arith.constant 0 : i32
    return %arg0, %arg2 : i32, i32
  }
  func.func @transform_1(%arg0: i32, %arg1: i32, %arg2: i32) -> (i32, i32) {
    %c0_i32 = arith.constant 0 : i32
    return %arg2, %arg1 : i32, i32
  }
  func.func @transform_2(%arg0: i32, %arg1: i32, %arg2: i32) -> (i32, i32) {
    %c0_i32 = arith.constant 0 : i32
    %c0_i32_0 = arith.constant 0 : i32
    return %c0_i32, %arg1 : i32, i32
  }
  func.func @transform_3(%arg0: i32, %arg1: i32, %arg2: i32) -> (i32, i32) {
    %c0_i32 = arith.constant 0 : i32
    return %arg0, %arg1 : i32, i32
  }
}

</mosaic_0001>

<bundles_post_ra>
// kernel: _lambda_.3
= control target key start
LH: loop header
LB: loop body
LE: loop exit
PB: predicated region body
PF: predicated region fallthrough
CT: control target
= control target key end

     0   :  { %v257_v0 = vmov 0.0   ;;  %vm258_vm0 = vmmov 0   ;;  %s336_s1 = inlined_call_operand.vmem [shape: bf16[128,128], index: 1, kind: input, shape index: {}]   ;;  %s337_s0 = inlined_call_operand.vmem [shape: bf16[48,128], index: 0, kind: input, shape index: {}]   ;;  %s338_s2 = inlined_call_operand.vmem [shape: f32[1,128], index: 2, kind: input, shape index: {}]   ;;  %s339_s3 = inlined_call_operand.vmem [shape: f32[48,128], index: 3, kind: output, shape index: {}]  }
   0x1   :  { %228 = vmatprep.subr.bf16.mxu1 %v257_v0  ;;  %v246_v1 = vld [vmem:[%s336_s1] sm:$0xff]   ;;  %200 = vmatprep.subr.bf16.mxu0 %v257_v0  ;;  %v247_v2 = vld [vmem:[%s336_s1 + $0x8] sm:$0xff]   ;;  %v248_v3 = vld [vmem:[%s336_s1 + $0x10] sm:$0xff]  }
   0x2   :  { %220 = vmatprep.mubr.msk.bf16.mxu1 %vm258_vm0, %v257_v0  ;;  %216 = vmatprep.mubr.msk.bf16.mxu0 %vm258_vm0, %v257_v0  ;;  %v249_v4 = vld [vmem:[%s336_s1 + $0x18] sm:$0xff]   ;;  %v250_v5 = vld [vmem:[%s336_s1 + $0x20] sm:$0xff]   ;;  %v251_v6 = vld [vmem:[%s336_s1 + $0x28] sm:$0xff]  }
   0x3   :  { %236 = vmatpush3.bf16.msra.mxu1 %v246_v1  ;;  %201 = vmatpush3.bf16.msra.mxu0 %v246_v1  ;;  %v252_v7 = vld [vmem:[%s336_s1 + $0x30] sm:$0xff]   ;;  %v253_v8 = vld [vmem:[%s336_s1 + $0x38] sm:$0xff]   ;;  %v254_v9 = vld [vmem:[%s337_s0 + $0x8] sm:$0xff]  }
   0x4   :  { %229 = vmatprep.subr.bf16.mxu1 %v257_v0  ;;  %202 = vmatprep.subr.bf16.mxu0 %v257_v0  ;;  %v255_v10 = vld [vmem:[%s337_s0] sm:$0xff]   ;;  %v256_v11 = vld [vmem:[%s337_s0 + $0x10] sm:$0xff]  }
   0x5   :  { %v177_v12 = vld [vmem:[%s338_s2] ss:$0 sm:$0xff] }
   0x7   :  { %237 = vmatpush3.bf16.msra.mxu1 %v247_v2  ;;  %203 = vmatpush3.bf16.msra.mxu0 %v247_v2 }
   0x8   :  { %230 = vmatprep.subr.bf16.mxu1 %v257_v0  ;;  %204 = vmatprep.subr.bf16.mxu0 %v257_v0 }
   0xb   :  { %238 = vmatpush3.bf16.msra.mxu1 %v248_v3  ;;  %205 = vmatpush3.bf16.msra.mxu0 %v248_v3 }
   0xc   :  { %231 = vmatprep.subr.bf16.mxu1 %v257_v0  ;;  %206 = vmatprep.subr.bf16.mxu0 %v257_v0 }
   0xf   :  { %239 = vmatpush3.bf16.msra.mxu1 %v249_v4  ;;  %207 = vmatpush3.bf16.msra.mxu0 %v249_v4 }
  0x10   :  { %232 = vmatprep.subr.bf16.mxu1 %v257_v0  ;;  %208 = vmatprep.subr.bf16.mxu0 %v257_v0 }
  0x13   :  { %240 = vmatpush3.bf16.msra.mxu1 %v250_v5  ;;  %209 = vmatpush3.bf16.msra.mxu0 %v250_v5 }
  0x14   :  { %233 = vmatprep.subr.bf16.mxu1 %v257_v0  ;;  %210 = vmatprep.subr.bf16.mxu0 %v257_v0 }
  0x17   :  { %241 = vmatpush3.bf16.msra.mxu1 %v251_v6  ;;  %211 = vmatpush3.bf16.msra.mxu0 %v251_v6 }
  0x18   :  { %234 = vmatprep.subr.bf16.mxu1 %v257_v0  ;;  %212 = vmatprep.subr.bf16.mxu0 %v257_v0 }
  0x1b   :  { %242 = vmatpush3.bf16.msra.mxu1 %v252_v7  ;;  %213 = vmatpush3.bf16.msra.mxu0 %v252_v7 }
  0x1c   :  { %235 = vmatprep.subr.bf16.mxu1 %v257_v0  ;;  %214 = vmatprep.subr.bf16.mxu0 %v257_v0 }
  0x1f   :  { %243 = vmatpush3.bf16.msra.mxu1 %v253_v8  ;;  %215 = vmatpush3.bf16.msra.mxu0 %v253_v8 }
  0x22   :  { %221 = vmatmul.mubr.bf16.vlgmr.msra.gmra.mrb[0].mxu1 %v254_v9  ;;  %217 = vmatmul.mubr.bf16.vlgmr.msra.gmra.mrb[0].mxu0 %v255_v10 }
  0x23   :  { %224 = vmatprep.mubr.msk.bf16.mxu1 %vm258_vm0, %v257_v0 }
  0x2a   :  { %225 = vmatmul.mubr.bf16.gmra.mrb[4].mxu1 %v256_v11 }
  0xf5   :  { %v152_v13 = vpop.f32.mrb[0].mxu1  ;;  %v144_v14 = vpop.f32.mrb[0].mxu0 }
  0xf6   :  { %v153_v15 = vadd.f32 %v177_v12, %v152_v13  ;;  %v222_v16 = vpop.f32.mrb[1].mxu1  ;;  %v145_v17 = vadd.f32 %v177_v12, %v144_v14  ;;  %v218_v18 = vpop.f32.mrb[1].mxu0 }
  0xf7   :  { %v155_v19 = vpop.f32.mrb[2].mxu1  ;;  %v147_v20 = vpop.f32.mrb[2].mxu0 }
  0xf8   :  { %169 = vst [vmem:[%s339_s3 + $0x10] sm:$0xff] %v153_v15  ;;  %v156_v21 = vadd.f32 %v177_v12, %v155_v19  ;;  %v223_v22 = vpop.f32.mrb[3].mxu1  ;;  %167 = vst [vmem:[%s339_s3] sm:$0xff] %v145_v17  ;;  %v148_v23 = vadd.f32 %v177_v12, %v147_v20  ;;  %v219_v24 = vpop.f32.mrb[3].mxu0 }
  0xfa   :  { %170 = vst [vmem:[%s339_s3 + $0x18] sm:$0xff] %v156_v21  ;;  %168 = vst [vmem:[%s339_s3 + $0x8] sm:$0xff] %v148_v23 }
  0xfd   :  { %v160_v25 = vpop.f32.mrb[4].mxu1 }
  0xfe   :  { %v161_v26 = vadd.f32 %v177_v12, %v160_v25  ;;  %v226_v27 = vpop.f32.mrb[5].mxu1 }
  0xff   :  { %v163_v28 = vpop.f32.mrb[6].mxu1 }
 0x100   :  { %171 = vst [vmem:[%s339_s3 + $0x20] sm:$0xff] %v161_v26  ;;  %v164_v29 = vadd.f32 %v177_v12, %v163_v28  ;;  %v227_v30 = vpop.f32.mrb[7].mxu1 }
 0x102   :  { %172 = vst [vmem:[%s339_s3 + $0x28] sm:$0xff] %v164_v29 }

// kernel: _lambda_.2
= control target key start
LH: loop header
LB: loop body
LE: loop exit
PB: predicated region body
PF: predicated region fallthrough
CT: control target
= control target key end

     0   :  { %s1977_s1 = inlined_call_operand.vmem [shape: bf16[512,384], index: 1, kind: input, shape index: {}]   ;;  %s1978_s0 = inlined_call_operand.vmem [shape: bf16[64,512], index: 0, kind: input, shape index: {}]   ;;  %s1979_s2 = inlined_call_operand.vmem [shape: f32[1,384], index: 2, kind: input, shape index: {}]   ;;  %s1980_s3 = inlined_call_operand.vmem [shape: bf16[64,384], index: 3, kind: output, shape index: {}]  }
   0x1   :  { %v1400_v0 = vld [vmem:[%s1977_s1 + $0x4] ss:$12 sps:$4 sm:$0xff]   ;;  %v1402_v1 = vld [vmem:[%s1977_s1] ss:$12 sps:$4 sm:$0xff]   ;;  %v1403_v2 = vld [vmem:[%s1977_s1 + $0x1c] ss:$12 sps:$4 sm:$0xff]  }
   0x2   :  { %768 = vmatprep.subr.bf16.mxu0 %v1400_v0  ;;  %v1405_v3 = vld [vmem:[%s1977_s1 + $0x18] ss:$12 sps:$4 sm:$0xff]   ;;  %v1406_v4 = vld [vmem:[%s1977_s1 + $0x34] ss:$12 sps:$4 sm:$0xff]   ;;  %v1408_v5 = vld [vmem:[%s1977_s1 + $0x30] ss:$12 sps:$4 sm:$0xff]  }
   0x3   :  { %769 = vmatpush1.bf16.msra.mxu0 %v1402_v1  ;;  %v1409_v6 = vld [vmem:[%s1977_s1 + $0x4c] ss:$12 sps:$4 sm:$0xff]   ;;  %v1411_v7 = vld [vmem:[%s1977_s1 + $0x48] ss:$12 sps:$4 sm:$0xff]   ;;  %v1412_v8 = vld [vmem:[%s1977_s1 + $0x64] ss:$12 sps:$4 sm:$0xff]  }
   0x4   :  { %770 = vmatprep.subr.bf16.mxu0 %v1403_v2  ;;  %v1424_v9 = vld [vmem:[%s1977_s1 + $0xc8] ss:$12 sps:$4 sm:$0xff]   ;;  %v1414_v11 = vld [vmem:[%s1977_s1 + $0x60] ss:$12 sps:$4 sm:$0xff]   ;;  %v1417_v15 = vld [vmem:[%s1977_s1 + $0x78] ss:$12 sps:$4 sm:$0xff]  }
   0x5   :  { %v1425_v10 = vld [vmem:[%s1977_s1 + $0x8] ss:$12 sps:$4 sm:$0xff]   ;;  %1288 = vmatprep.subr.bf16.mxu1 %v1424_v9  ;;  %v1429_v12 = vld [vmem:[%s1977_s1 + $0xe0] ss:$12 sps:$4 sm:$0xff]   ;;  %v1434_v16 = vld [vmem:[%s1977_s1 + $0xf8] ss:$12 sps:$4 sm:$0xff]  }
   0x6   :  { %1289 = vmatpush3.bf16.msra.mxu1 %v1425_v10  ;;  %v1430_v13 = vld [vmem:[%s1977_s1 + $0x20] ss:$12 sps:$4 sm:$0xff]   ;;  %v1415_v14 = vld [vmem:[%s1977_s1 + $0x7c] ss:$12 sps:$4 sm:$0xff]   ;;  %v1435_v17 = vld [vmem:[%s1977_s1 + $0x38] ss:$12 sps:$4 sm:$0xff]  }
   0x7   :  { %771 = vmatpush1.bf16.msra.mxu0 %v1405_v3  ;;  %1290 = vmatprep.subr.bf16.mxu1 %v1429_v12  ;;  %v1418_v18 = vld [vmem:[%s1977_s1 + $0x94] ss:$12 sps:$4 sm:$0xff]   ;;  %v1439_v19 = vld [vmem:[%s1977_s1 + $0x110] ss:$12 sps:$4 sm:$0xff]   ;;  %v1421_v22 = vld [vmem:[%s1977_s1 + $0xac] ss:$12 sps:$4 sm:$0xff]  }
   0x8   :  { %772 = vmatprep.subr.bf16.mxu0 %v1406_v4  ;;  %v1440_v20 = vld [vmem:[%s1977_s1 + $0x50] ss:$12 sps:$4 sm:$0xff]   ;;  %v1444_v23 = vld [vmem:[%s1977_s1 + $0x128] ss:$12 sps:$4 sm:$0xff]   ;;  %v1449_v27 = vld [vmem:[%s1977_s1 + $0x140] ss:$12 sps:$4 sm:$0xff]  }
   0x9   :  { %v1420_v21 = vld [vmem:[%s1977_s1 + $0x90] ss:$12 sps:$4 sm:$0xff]   ;;  %v1423_v24 = vld [vmem:[%s1977_s1 + $0xa8] ss:$12 sps:$4 sm:$0xff]   ;;  %v1428_v28 = vld [vmem:[%s1977_s1 + $0xc0] ss:$12 sps:$4 sm:$0xff]  }
   0xa   :  { %1291 = vmatpush3.bf16.msra.mxu1 %v1430_v13  ;;  %v1445_v25 = vld [vmem:[%s1977_s1 + $0x68] ss:$12 sps:$4 sm:$0xff]   ;;  %v1426_v26 = vld [vmem:[%s1977_s1 + $0xc4] ss:$12 sps:$4 sm:$0xff]   ;;  %v1450_v29 = vld [vmem:[%s1977_s1 + $0x80] ss:$12 sps:$4 sm:$0xff]  }
   0xb   :  { %773 = vmatpush1.bf16.msra.mxu0 %v1408_v5  ;;  %1292 = vmatprep.subr.bf16.mxu1 %v1434_v16  ;;  %v1454_v30 = vld [vmem:[%s1977_s1 + $0x158] ss:$12 sps:$4 sm:$0xff]   ;;  %v1431_v31 = vld [vmem:[%s1977_s1 + $0xdc] ss:$12 sps:$4 sm:$0xff]   ;;  %v1436_v35 = vld [vmem:[%s1977_s1 + $0xf4] ss:$12 sps:$4 sm:$0xff]  }
   0xc   :  { %774 = vmatprep.subr.bf16.mxu0 %v1409_v6  ;;  %v1433_v32 = vld [vmem:[%s1977_s1 + $0xd8] ss:$12 sps:$4 sm:$0xff]   ;;  %v1459_v34 = vld [vmem:[%s1977_s1 + $0x170] ss:$12 sps:$4 sm:$0xff]   ;;  %v1467_v39 = vld [vmem:[%s1977_s1 + $0x248] ss:$12 sps:$4 sm:$0xff]  }
   0xd   :  { %v1455_v33 = vld [vmem:[%s1977_s1 + $0x98] ss:$12 sps:$4 sm:$0xff]   ;;  %v1438_v36 = vld [vmem:[%s1977_s1 + $0xf0] ss:$12 sps:$4 sm:$0xff]   ;;  %v1443_v41 = vld [vmem:[%s1977_s1 + $0x108] ss:$12 sps:$4 sm:$0xff]  }
   0xe   :  { %1293 = vmatpush3.bf16.msra.mxu1 %v1435_v17  ;;  %v1460_v37 = vld [vmem:[%s1977_s1 + $0xb0] ss:$12 sps:$4 sm:$0xff]   ;;  %v1465_v38 = vld [vmem:[%s1978_s0 + $0x4] ss:$16 sps:$4 sm:$0xff]   ;;  %v1441_v40 = vld [vmem:[%s1977_s1 + $0x10c] ss:$12 sps:$4 sm:$0xff]  }
   0xf   :  { %775 = vmatpush1.bf16.msra.mxu0 %v1411_v7  ;;  %1294 = vmatprep.subr.bf16.mxu1 %v1439_v19  ;;  %v1463_v42 = vld [vmem:[%s1978_s0] ss:$16 sps:$4 sm:$0xff]   ;;  %v1468_v43 = vld [vmem:[%s1977_s1 + $0x188] ss:$12 sps:$4 sm:$0xff]   ;;  %v1480_v49 = vld [vmem:[%s1977_s1 + $0x278] ss:$12 sps:$4 sm:$0xff]  }
  0x10   :  { %776 = vmatprep.subr.bf16.mxu0 %v1412_v8  ;;  %946 = vmatprep.mubr.bf16.mxu1 %v1465_v38  ;;  %v1472_v44 = vld [vmem:[%s1977_s1 + $0x260] ss:$12 sps:$4 sm:$0xff]   ;;  %v1446_v45 = vld [vmem:[%s1977_s1 + $0x124] ss:$12 sps:$4 sm:$0xff]   ;;  %v1451_v50 = vld [vmem:[%s1977_s1 + $0x13c] ss:$12 sps:$4 sm:$0xff]  }
  0x11   :  { %800 = vmatprep.mubr.bf16.mxu0 %v1465_v38  ;;  %v1448_v46 = vld [vmem:[%s1977_s1 + $0x120] ss:$12 sps:$4 sm:$0xff]   ;;  %v1477_v48 = vld [vmem:[%s1978_s0 + $0x24] ss:$16 sps:$4 sm:$0xff]   ;;  %v1485_v54 = vld [vmem:[%s1977_s1 + $0x290] ss:$12 sps:$4 sm:$0xff]  }
  0x12   :  { %1295 = vmatpush3.bf16.msra.mxu1 %v1440_v20  ;;  %v1473_v47 = vld [vmem:[%s1977_s1 + $0x1a0] ss:$12 sps:$4 sm:$0xff]   ;;  %v1453_v51 = vld [vmem:[%s1977_s1 + $0x138] ss:$12 sps:$4 sm:$0xff]   ;;  %v1458_v56 = vld [vmem:[%s1977_s1 + $0x150] ss:$12 sps:$4 sm:$0xff]  }
  0x13   :  { %777 = vmatpush1.bf16.msra.mxu0 %v1414_v11  ;;  %1296 = vmatprep.subr.bf16.mxu1 %v1444_v23  ;;  %v1479_v52 = vld [vmem:[%s1978_s0 + $0x20] ss:$16 sps:$4 sm:$0xff]   ;;  %v1481_v53 = vld [vmem:[%s1977_s1 + $0x1b8] ss:$12 sps:$4 sm:$0xff]   ;;  %v1493_v59 = vld [vmem:[%s1977_s1 + $0x2a8] ss:$12 sps:$4 sm:$0xff]  }
  0x14   :  { %778 = vmatprep.subr.bf16.mxu0 %v1415_v14  ;;  %v1456_v55 = vld [vmem:[%s1977_s1 + $0x154] ss:$12 sps:$4 sm:$0xff]   ;;  %v1486_v57 = vld [vmem:[%s1977_s1 + $0x1d0] ss:$12 sps:$4 sm:$0xff]   ;;  %v1461_v60 = vld [vmem:[%s1977_s1 + $0x16c] ss:$12 sps:$4 sm:$0xff]  }
  0x15   :  { %v1490_v58 = vld [vmem:[%s1978_s0 + $0x44] ss:$16 sps:$4 sm:$0xff]   ;;  %v1492_v62 = vld [vmem:[%s1978_s0 + $0x40] ss:$16 sps:$4 sm:$0xff]   ;;  %v1476_v6 = vld [vmem:[%s1977_s1 + $0x19c] ss:$12 sps:$4 sm:$0xff]  }
  0x16   :  { %1297 = vmatpush3.bf16.msra.mxu1 %v1445_v25  ;;  %v1466_v61 = vld [vmem:[%s1977_s1 + $0x168] ss:$12 sps:$4 sm:$0xff]   ;;  %v1498_v0 = vld [vmem:[%s1977_s1 + $0x2c0] ss:$12 sps:$4 sm:$0xff]   ;;  %v1471_v1 = vld [vmem:[%s1977_s1 + $0x184] ss:$12 sps:$4 sm:$0xff]  }
  0x17   :  { %779 = vmatpush1.bf16.msra.mxu0 %v1417_v15  ;;  %1298 = vmatprep.subr.bf16.mxu1 %v1449_v27  ;;  %v1494_v63 = vld [vmem:[%s1977_s1 + $0x1e8] ss:$12 sps:$4 sm:$0xff]   ;;  %v1469_v2 = vld [vmem:[%s1977_s1 + $0x180] ss:$12 sps:$4 sm:$0xff]   ;;  %v1506_v5 = vld [vmem:[%s1977_s1 + $0x2d8] ss:$12 sps:$4 sm:$0xff]  }
  0x18   :  { %780 = vmatprep.subr.bf16.mxu0 %v1418_v18  ;;  %v1499_v3 = vld [vmem:[%s1977_s1 + $0x200] ss:$12 sps:$4 sm:$0xff]   ;;  %v1503_v4 = vld [vmem:[%s1978_s0 + $0x64] ss:$16 sps:$4 sm:$0xff]   ;;  %v1511_v10 = vld [vmem:[%s1977_s1 + $0x2f0] ss:$12 sps:$4 sm:$0xff]  }
  0x19   :  { %v1474_v7 = vld [vmem:[%s1977_s1 + $0x198] ss:$12 sps:$4 sm:$0xff]   ;;  %v1505_v8 = vld [vmem:[%s1978_s0 + $0x60] ss:$16 sps:$4 sm:$0xff]   ;;  %v1518_v13 = vld [vmem:[%s1978_s0 + $0xc] ss:$16 sps:$4 sm:$0xff]  }
  0x1a   :  { %1299 = vmatpush3.bf16.msra.mxu1 %v1450_v29  ;;  %v1507_v9 = vld [vmem:[%s1977_s1 + $0x218] ss:$12 sps:$4 sm:$0xff]   ;;  %v1484_v11 = vld [vmem:[%s1977_s1 + $0x1b4] ss:$12 sps:$4 sm:$0xff]   ;;  %v1512_v12 = vld [vmem:[%s1977_s1 + $0x230] ss:$12 sps:$4 sm:$0xff]  }
  0x1b   :  { %781 = vmatpush1.bf16.msra.mxu0 %v1420_v21  ;;  %1300 = vmatprep.subr.bf16.mxu1 %v1454_v30  ;;  %v1482_v14 = vld [vmem:[%s1977_s1 + $0x1b0] ss:$12 sps:$4 sm:$0xff]   ;;  %v1489_v15 = vld [vmem:[%s1977_s1 + $0x1cc] ss:$12 sps:$4 sm:$0xff]   ;;  %v1487_v18 = vld [vmem:[%s1977_s1 + $0x1c8] ss:$12 sps:$4 sm:$0xff]  }
  0x1c   :  { %782 = vmatprep.subr.bf16.mxu0 %v1421_v22  ;;  %v1815_v16 = vld [vmem:[%s1978_s0 + $0x8] ss:$16 sps:$4 sm:$0xff]   ;;  %v1820_v17 = vld [vmem:[%s1978_s0 + $0x2c] ss:$16 sps:$4 sm:$0xff]   ;;  %v1497_v19 = vld [vmem:[%s1977_s1 + $0x1e4] ss:$12 sps:$4 sm:$0xff]  }
  0x1d   :  { %v1495_v20 = vld [vmem:[%s1977_s1 + $0x1e0] ss:$12 sps:$4 sm:$0xff]   ;;  %v1502_v21 = vld [vmem:[%s1977_s1 + $0x1fc] ss:$12 sps:$4 sm:$0xff]  }
  0x1e   :  { %1301 = vmatpush3.bf16.msra.mxu1 %v1455_v33  ;;  %v1527_v22 = vld [vmem:[%s1978_s0 + $0x28] ss:$16 sps:$4 sm:$0xff]   ;;  %v1534_v23 = vld [vmem:[%s1978_s0 + $0x4c] ss:$16 sps:$4 sm:$0xff]   ;;  %v1510_v25 = vld [vmem:[%s1977_s1 + $0x214] ss:$12 sps:$4 sm:$0xff]  }
  0x1f   :  { %783 = vmatpush1.bf16.msra.mxu0 %v1423_v24  ;;  %1302 = vmatprep.subr.bf16.mxu1 %v1459_v34  ;;  %v1500_v24 = vld [vmem:[%s1977_s1 + $0x1f8] ss:$12 sps:$4 sm:$0xff]   ;;  %v1543_v29 = vld [vmem:[%s1978_s0 + $0x6c] ss:$16 sps:$4 sm:$0xff]   ;;  %v1513_v30 = vld [vmem:[%s1977_s1 + $0x228] ss:$12 sps:$4 sm:$0xff]  }
  0x20   :  { %784 = vmatprep.subr.bf16.mxu0 %v1426_v26  ;;  %v1508_v26 = vld [vmem:[%s1977_s1 + $0x210] ss:$12 sps:$4 sm:$0xff]   ;;  %v1515_v27 = vld [vmem:[%s1977_s1 + $0x22c] ss:$12 sps:$4 sm:$0xff]  }
  0x21   :  { %v1524_v33 = vld [vmem:[%s1977_s1 + $0x25c] ss:$12 sps:$4 sm:$0xff]   ;;  %v1533_v38 = vld [vmem:[%s1977_s1 + $0x28c] ss:$12 sps:$4 sm:$0xff]  }
  0x22   :  { %1303 = vmatpush3.bf16.msra.mxu1 %v1460_v37  ;;  %v1545_v34 = vld [vmem:[%s1978_s0 + $0x68] ss:$16 sps:$4 sm:$0xff]   ;;  %v1528_v37 = vld [vmem:[%s1977_s1 + $0x270] ss:$12 sps:$4 sm:$0xff]  }
  0x23   :  { %785 = vmatpush1.bf16.msra.mxu0 %v1428_v28  ;;  %1328 = vmatprep.subr.bf16.mxu1 %v1467_v39  ;;  %v1536_v28 = vld [vmem:[%s1978_s0 + $0x48] ss:$16 sps:$4 sm:$0xff]  }
  0x24   :  { %786 = vmatprep.subr.bf16.mxu0 %v1431_v31  ;;  %v1521_v31 = vld [vmem:[%s1977_s1 + $0x244] ss:$12 sps:$4 sm:$0xff]   ;;  %v1531_v39 = vld [vmem:[%s1977_s1 + $0x288] ss:$12 sps:$4 sm:$0xff]  }
  0x25   :  { %947 = vmatmul.mubr.bf16.vlgmr.msra.gmra.mrb[0].mxu1 %v1463_v42 }
  0x26   :  { %1329 = vmatpush3.bf16.msra.mxu1 %v1468_v43  ;;  %954 = vmatprep.mubr.bf16.mxu1 %v1477_v48  ;;  %v1540_v43 = vld [vmem:[%s1977_s1 + $0x2b8] ss:$12 sps:$4 sm:$0xff]  }
  0x27   :  { %787 = vmatpush1.bf16.msra.mxu0 %v1433_v32  ;;  %1330 = vmatprep.subr.bf16.mxu1 %v1472_v44  ;;  %v1519_v32 = vld [vmem:[%s1977_s1 + $0x240] ss:$12 sps:$4 sm:$0xff]  }
  0x28   :  { %788 = vmatprep.subr.bf16.mxu0 %v1436_v35  ;;  %v1522_v35 = vld [vmem:[%s1977_s1 + $0x258] ss:$12 sps:$4 sm:$0xff]   ;;  %v1548_v44 = vld [vmem:[%s1977_s1 + $0x2d4] ss:$12 sps:$4 sm:$0xff]  }
  0x2a   :  { %1331 = vmatpush3.bf16.msra.mxu1 %v1473_v47  ;;  %v1549_v47 = vld [vmem:[%s1977_s1 + $0x2e8] ss:$12 sps:$4 sm:$0xff]  }
  0x2b   :  { %789 = vmatpush1.bf16.msra.mxu0 %v1438_v36  ;;  %1332 = vmatprep.subr.bf16.mxu1 %v1480_v49  ;;  %v1530_v36 = vld [vmem:[%s1977_s1 + $0x274] ss:$12 sps:$4 sm:$0xff]  }
  0x2c   :  { %790 = vmatprep.subr.bf16.mxu0 %v1441_v40  ;;  %v1539_v40 = vld [vmem:[%s1977_s1 + $0x2a4] ss:$12 sps:$4 sm:$0xff]  }
  0x2d   :  { %955 = vmatmul.mubr.bf16.gmra.mrb[4].mxu1 %v1479_v52 }
  0x2e   :  { %1333 = vmatpush3.bf16.msra.mxu1 %v1481_v53  ;;  %962 = vmatprep.mubr.bf16.mxu1 %v1490_v58 }
  0x2f   :  { %791 = vmatpush1.bf16.msra.mxu0 %v1443_v41  ;;  %1334 = vmatprep.subr.bf16.mxu1 %v1485_v54  ;;  %v1537_v41 = vld [vmem:[%s1977_s1 + $0x2a0] ss:$12 sps:$4 sm:$0xff]  }
  0x30   :  { %792 = vmatprep.subr.bf16.mxu0 %v1446_v45  ;;  %v1546_v45 = vld [vmem:[%s1977_s1 + $0x2d0] ss:$12 sps:$4 sm:$0xff]  }
  0x32   :  { %1335 = vmatpush3.bf16.msra.mxu1 %v1486_v57 }
  0x33   :  { %793 = vmatpush1.bf16.msra.mxu0 %v1448_v46  ;;  %1336 = vmatprep.subr.bf16.mxu1 %v1493_v59  ;;  %v1551_v46 = vld [vmem:[%s1977_s1 + $0x2ec] ss:$12 sps:$4 sm:$0xff]  }
  0x34   :  { %794 = vmatprep.subr.bf16.mxu0 %v1451_v50 }
  0x35   :  { %963 = vmatmul.mubr.bf16.gmra.mrb[8].mxu1 %v1492_v62 }
  0x36   :  { %1337 = vmatpush3.bf16.msra.mxu1 %v1494_v63  ;;  %970 = vmatprep.mubr.bf16.mxu1 %v1503_v4 }
  0x37   :  { %795 = vmatpush1.bf16.msra.mxu0 %v1453_v51  ;;  %1338 = vmatprep.subr.bf16.mxu1 %v1498_v0 }
  0x38   :  { %796 = vmatprep.subr.bf16.mxu0 %v1456_v55 }
  0x3a   :  { %1339 = vmatpush3.bf16.msra.mxu1 %v1499_v3 }
  0x3b   :  { %797 = vmatpush1.bf16.msra.mxu0 %v1458_v56  ;;  %1340 = vmatprep.subr.bf16.mxu1 %v1506_v5 }
  0x3c   :  { %798 = vmatprep.subr.bf16.mxu0 %v1461_v60  ;;  %v161_v60 = vlaneseq }
  0x3d   :  { %971 = vmatmul.mubr.bf16.gmra.mrb[12].mxu1 %v1505_v8 }
  0x3e   :  { %1341 = vmatpush3.bf16.msra.mxu1 %v1507_v9  ;;  %1011 = vmatprep.mubr.bf16.mxu1 %v1518_v13 }
  0x3f   :  { %799 = vmatpush1.bf16.msra.mxu0 %v1466_v61  ;;  %1342 = vmatprep.subr.bf16.mxu1 %v1511_v10 }
  0x40   :  { %841 = vmatprep.subr.bf16.mxu0 %v1471_v1 }
  0x42   :  { %801 = vmatmul.mubr.bf16.vlgmr.msra.gmra.mrb[0].mxu0 %v1463_v42  ;;  %1343 = vmatpush3.bf16.msra.mxu1 %v1512_v12  ;;  %v1542_v42 = vld [vmem:[%s1977_s1 + $0x2bc] ss:$12 sps:$4 sm:$0xff]  }
  0x43   :  { %842 = vmatpush1.bf16.msra.mxu0 %v1469_v2  ;;  %810 = vmatprep.mubr.bf16.mxu0 %v1477_v48  ;;  %v1916_v2 = vshrl.u32 %v161_v60, 7 }
  0x44   :  { %843 = vmatprep.subr.bf16.mxu0 %v1476_v6  ;;  %v1922_v6 = vld [vmem:[%s1979_s2] sm:$0x7] }
  0x45   :  { %1012 = vmatmul.mubr.bf16.vlgmr.msra.gmra.mrb[16].mxu1 %v1815_v16 }
  0x46   :  { %1019 = vmatprep.mubr.bf16.mxu1 %v1820_v17 }
  0x47   :  { %844 = vmatpush1.bf16.msra.mxu0 %v1474_v7 }
  0x48   :  { %845 = vmatprep.subr.bf16.mxu0 %v1484_v11 }
  0x4a   :  { %811 = vmatmul.mubr.bf16.gmra.mrb[4].mxu0 %v1479_v52 }
  0x4b   :  { %846 = vmatpush1.bf16.msra.mxu0 %v1482_v14  ;;  %820 = vmatprep.mubr.bf16.mxu0 %v1490_v58 }
  0x4c   :  { %847 = vmatprep.subr.bf16.mxu0 %v1489_v15 }
  0x4d   :  { %1020 = vmatmul.mubr.bf16.gmra.mrb[20].mxu1 %v1527_v22 }
  0x4e   :  { %1027 = vmatprep.mubr.bf16.mxu1 %v1534_v23 }
  0x4f   :  { %848 = vmatpush1.bf16.msra.mxu0 %v1487_v18 }
  0x50   :  { %849 = vmatprep.subr.bf16.mxu0 %v1497_v19 }
  0x52   :  { %821 = vmatmul.mubr.bf16.gmra.mrb[8].mxu0 %v1492_v62 }
  0x53   :  { %850 = vmatpush1.bf16.msra.mxu0 %v1495_v20  ;;  %830 = vmatprep.mubr.bf16.mxu0 %v1503_v4  ;;  %v171_v4 = vsub.s32 2, %v1916_v2 }
  0x54   :  { %851 = vmatprep.subr.bf16.mxu0 %v1502_v21 }
  0x55   :  { %1028 = vmatmul.mubr.bf16.gmra.mrb[24].mxu1 %v1536_v28  ;;  %v172_v11 = vrot.slane %v1922_v6, %v171_v4 }
  0x56   :  { %1035 = vmatprep.mubr.bf16.mxu1 %v1543_v29 }
  0x57   :  { %852 = vmatpush1.bf16.msra.mxu0 %v1500_v24 }
  0x58   :  { %853 = vmatprep.subr.bf16.mxu0 %v1510_v25 }
  0x5a   :  { %831 = vmatmul.mubr.bf16.gmra.mrb[12].mxu0 %v1505_v8 }
  0x5b   :  { %854 = vmatpush1.bf16.msra.mxu0 %v1508_v26  ;;  %873 = vmatprep.mubr.bf16.mxu0 %v1518_v13 }
  0x5c   :  { %855 = vmatprep.subr.bf16.mxu0 %v1515_v27 }
  0x5d   :  { %1036 = vmatmul.mubr.bf16.gmra.mrb[28].mxu1 %v1545_v34 }
  0x5f   :  { %856 = vmatpush1.bf16.msra.mxu0 %v1513_v30 }
  0x60   :  { %857 = vmatprep.subr.bf16.mxu0 %v1521_v31 }
  0x63   :  { %858 = vmatpush1.bf16.msra.mxu0 %v1519_v32 }
  0x64   :  { %859 = vmatprep.subr.bf16.mxu0 %v1524_v33 }
  0x67   :  { %860 = vmatpush1.bf16.msra.mxu0 %v1522_v35 }
  0x68   :  { %861 = vmatprep.subr.bf16.mxu0 %v1530_v36 }
  0x6b   :  { %862 = vmatpush1.bf16.msra.mxu0 %v1528_v37 }
  0x6c   :  { %863 = vmatprep.subr.bf16.mxu0 %v1533_v38 }
  0x6f   :  { %864 = vmatpush1.bf16.msra.mxu0 %v1531_v39 }
  0x70   :  { %865 = vmatprep.subr.bf16.mxu0 %v1539_v40 }
  0x73   :  { %866 = vmatpush1.bf16.msra.mxu0 %v1537_v41 }
  0x74   :  { %867 = vmatprep.subr.bf16.mxu0 %v1542_v42 }
  0x77   :  { %868 = vmatpush1.bf16.msra.mxu0 %v1540_v43 }
  0x78   :  { %869 = vmatprep.subr.bf16.mxu0 %v1548_v44 }
  0x7b   :  { %870 = vmatpush1.bf16.msra.mxu0 %v1546_v45 }
  0x7c   :  { %871 = vmatprep.subr.bf16.mxu0 %v1551_v46 }
  0x7f   :  { %872 = vmatpush1.bf16.msra.mxu0 %v1549_v47 }
  0x82   :  { %874 = vmatmul.mubr.bf16.vlgmr.msra.gmra.mrb[0].mxu0 %v1815_v16 }
  0x83   :  { %883 = vmatprep.mubr.bf16.mxu0 %v1820_v17 }
  0x8a   :  { %884 = vmatmul.mubr.bf16.gmra.mrb[4].mxu0 %v1527_v22 }
  0x8b   :  { %893 = vmatprep.mubr.bf16.mxu0 %v1534_v23 }
  0x92   :  { %894 = vmatmul.mubr.bf16.gmra.mrb[8].mxu0 %v1536_v28 }
  0x93   :  { %903 = vmatprep.mubr.bf16.mxu0 %v1543_v29 }
  0x9a   :  { %904 = vmatmul.mubr.bf16.gmra.mrb[12].mxu0 %v1545_v34 }
  0xf8   :  { %v1304_v48 = vpop.f32.mrb[0].mxu1 }
  0xf9   :  { %v1305_v49 = vpop.f32.mrb[1].mxu1 }
  0xfa   :  { %v1306_v50 = vadd.f32 %v1305_v49, %v1304_v48  ;;  %v1307_v51 = vpop.f32.mrb[2].mxu1 }
  0xfb   :  { %v1308_v52 = vpop.f32.mrb[3].mxu1 }
  0xfc   :  { %v1309_v53 = vadd.f32 %v1308_v52, %v1307_v51  ;;  %v949_v13 = vadd.f32 %v1306_v50, %v172_v11 }
  0xfe   :  { %v952_v16 = vadd.f32 %v1309_v53, %v172_v11 }
 0x100   :  { %v1310_v54 = vpop.f32.mrb[4].mxu1 }
 0x101   :  { %v1311_v55 = vpop.f32.mrb[5].mxu1 }
 0x102   :  { %v1312_v56 = vadd.f32 %v1311_v55, %v1310_v54  ;;  %v1313_v57 = vpop.f32.mrb[6].mxu1 }
 0x103   :  { %v1314_v58 = vpop.f32.mrb[7].mxu1 }
 0x104   :  { %v1315_v59 = vadd.f32 %v1314_v58, %v1313_v57  ;;  %v957_v24 = vadd.f32 %v1312_v56, %v172_v11 }
 0x106   :  { %v960_v28 = vadd.f32 %v1315_v59, %v172_v11 }
 0x108   :  { %v1316_v61 = vpop.f32.mrb[8].mxu1 }
 0x109   :  { %v1317_v62 = vpop.f32.mrb[9].mxu1 }
 0x10a   :  { %v1318_v63 = vadd.f32 %v1317_v62, %v1316_v61  ;;  %v1319_v0 = vpop.f32.mrb[10].mxu1  ;;  %v163_v61 = vsub.s32 0, %v1916_v2  ;;  %v167_v62 = vsub.s32 1, %v1916_v2 }
 0x10b   :  { %v1320_v1 = vpop.f32.mrb[11].mxu1 }
 0x10c   :  { %v1321_v3 = vadd.f32 %v1320_v1, %v1319_v0  ;;  %v965_v36 = vadd.f32 %v1318_v63, %v172_v11  ;;  %v164_v63 = vrot.slane %v1922_v6, %v163_v61  ;;  %v168_v0 = vrot.slane %v1922_v6, %v167_v62 }
 0x10e   :  { %v968_v40 = vadd.f32 %v1321_v3, %v172_v11 }
 0x110   :  { %v1322_v5 = vpop.f32.mrb[12].mxu1 }
 0x111   :  { %v1323_v7 = vpop.f32.mrb[13].mxu1 }
 0x112   :  { %v1324_v8 = vadd.f32 %v1323_v7, %v1322_v5  ;;  %v1325_v9 = vpop.f32.mrb[14].mxu1 }
 0x113   :  { %v1326_v10 = vpop.f32.mrb[15].mxu1 }
 0x114   :  { %v1327_v12 = vadd.f32 %v1326_v10, %v1325_v9  ;;  %v973_v48 = vadd.f32 %v1324_v8, %v172_v11 }
 0x116   :  { %v976_v52 = vadd.f32 %v1327_v12, %v172_v11 }
 0x118   :  { %v1344_v14 = vpop.f32.mrb[16].mxu1 }
 0x119   :  { %v1345_v15 = vpop.f32.mrb[17].mxu1 }
 0x11a   :  { %v1346_v17 = vadd.f32 %v1345_v15, %v1344_v14  ;;  %v1347_v18 = vpop.f32.mrb[18].mxu1 }
 0x11b   :  { %v1348_v19 = vpop.f32.mrb[19].mxu1 }
 0x11c   :  { %v1014_v20 = vadd.f32 %v1346_v17, %v949_v13  ;;  %v1349_v21 = vadd.f32 %v1348_v19, %v1347_v18 }
 0x11e   :  { %v1273_v22 = vpack.c.bf16 %v1014_v20, %v1014_v20  ;;  %v1017_v23 = vadd.f32 %v1349_v21, %v952_v16 }
 0x120   :  { %1125 = vst [vmem:[%s1980_s3 + $0x8] sm:$0xf] %v1273_v22  ;;  %v1275_v25 = vpack.c.bf16 %v1017_v23, %v1017_v23  ;;  %v1350_v26 = vpop.f32.mrb[20].mxu1 }
 0x121   :  { %v1351_v27 = vpop.f32.mrb[21].mxu1 }
 0x122   :  { %1127 = vst [vmem:[%s1980_s3 + $0x14] sm:$0xf] %v1275_v25  ;;  %v1352_v29 = vadd.f32 %v1351_v27, %v1350_v26  ;;  %v1353_v30 = vpop.f32.mrb[22].mxu1 }
 0x123   :  { %v1354_v31 = vpop.f32.mrb[23].mxu1 }
 0x124   :  { %v1022_v32 = vadd.f32 %v1352_v29, %v957_v24  ;;  %v1355_v33 = vadd.f32 %v1354_v31, %v1353_v30 }
 0x126   :  { %v1277_v34 = vpack.c.bf16 %v1022_v32, %v1022_v32  ;;  %v1025_v35 = vadd.f32 %v1355_v33, %v960_v28 }
 0x128   :  { %1129 = vst [vmem:[%s1980_s3 + $0x20] sm:$0xf] %v1277_v34  ;;  %v1279_v37 = vpack.c.bf16 %v1025_v35, %v1025_v35  ;;  %v1356_v38 = vpop.f32.mrb[24].mxu1 }
 0x129   :  { %v1357_v39 = vpop.f32.mrb[25].mxu1 }
 0x12a   :  { %1131 = vst [vmem:[%s1980_s3 + $0x2c] sm:$0xf] %v1279_v37  ;;  %v1358_v41 = vadd.f32 %v1357_v39, %v1356_v38  ;;  %v1359_v42 = vpop.f32.mrb[26].mxu1 }
 0x12b   :  { %v1360_v43 = vpop.f32.mrb[27].mxu1 }
 0x12c   :  { %v1030_v44 = vadd.f32 %v1358_v41, %v965_v36  ;;  %v1361_v45 = vadd.f32 %v1360_v43, %v1359_v42 }
 0x12e   :  { %v1281_v46 = vpack.c.bf16 %v1030_v44, %v1030_v44  ;;  %v1033_v47 = vadd.f32 %v1361_v45, %v968_v40 }
 0x130   :  { %1133 = vst [vmem:[%s1980_s3 + $0x38] sm:$0xf] %v1281_v46  ;;  %v1283_v49 = vpack.c.bf16 %v1033_v47, %v1033_v47  ;;  %v1362_v50 = vpop.f32.mrb[28].mxu1 }
 0x131   :  { %v1363_v51 = vpop.f32.mrb[29].mxu1 }
 0x132   :  { %1135 = vst [vmem:[%s1980_s3 + $0x44] sm:$0xf] %v1283_v49  ;;  %v1364_v53 = vadd.f32 %v1363_v51, %v1362_v50  ;;  %v1365_v54 = vpop.f32.mrb[30].mxu1 }
 0x133   :  { %v1366_v55 = vpop.f32.mrb[31].mxu1 }
 0x134   :  { %v1038_v56 = vadd.f32 %v1364_v53, %v973_v48  ;;  %v1367_v57 = vadd.f32 %v1366_v55, %v1365_v54 }
 0x136   :  { %v1285_v58 = vpack.c.bf16 %v1038_v56, %v1038_v56  ;;  %v1041_v59 = vadd.f32 %v1367_v57, %v976_v52 }
 0x138   :  { %1137 = vst [vmem:[%s1980_s3 + $0x50] sm:$0xf] %v1285_v58  ;;  %v1287_v60 = vpack.c.bf16 %v1041_v59, %v1041_v59 }
 0x13a   :  { %1139 = vst [vmem:[%s1980_s3 + $0x5c] sm:$0xf] %v1287_v60 }
 0x155   :  { %v875_v1 = vpop.f32.mrb[0].mxu0 }
 0x156   :  { %v1368_v3 = vadd.f32 %v875_v1, %v164_v63  ;;  %v877_v4 = vpop.f32.mrb[1].mxu0 }
 0x157   :  { %v1369_v5 = vadd.f32 %v877_v4, %v168_v0  ;;  %v879_v7 = vpop.f32.mrb[2].mxu0 }
 0x158   :  { %v1370_v8 = vadd.f32 %v879_v7, %v164_v63  ;;  %v881_v9 = vpop.f32.mrb[3].mxu0 }
 0x159   :  { %v1272_v10 = vpack.c.bf16 %v1369_v5, %v1368_v3  ;;  %v1371_v11 = vadd.f32 %v881_v9, %v168_v0 }
 0x15b   :  { %1124 = vst [vmem:[%s1980_s3] sm:$0xff] %v1272_v10  ;;  %v1274_v12 = vpack.c.bf16 %v1371_v11, %v1370_v8 }
 0x15d   :  { %1126 = vst [vmem:[%s1980_s3 + $0xc] sm:$0xff] %v1274_v12  ;;  %v885_v2 = vpop.f32.mrb[4].mxu0 }
 0x15e   :  { %v1372_v6 = vadd.f32 %v885_v2, %v164_v63  ;;  %v887_v13 = vpop.f32.mrb[5].mxu0 }
 0x15f   :  { %v1373_v14 = vadd.f32 %v887_v13, %v168_v0  ;;  %v889_v15 = vpop.f32.mrb[6].mxu0 }
 0x160   :  { %v1374_v16 = vadd.f32 %v889_v15, %v164_v63  ;;  %v891_v17 = vpop.f32.mrb[7].mxu0 }
 0x161   :  { %v1276_v18 = vpack.c.bf16 %v1373_v14, %v1372_v6  ;;  %v1375_v19 = vadd.f32 %v891_v17, %v168_v0 }
 0x163   :  { %1128 = vst [vmem:[%s1980_s3 + $0x18] sm:$0xff] %v1276_v18  ;;  %v1278_v20 = vpack.c.bf16 %v1375_v19, %v1374_v16 }
 0x165   :  { %1130 = vst [vmem:[%s1980_s3 + $0x24] sm:$0xff] %v1278_v20  ;;  %v895_v21 = vpop.f32.mrb[8].mxu0 }
 0x166   :  { %v1376_v22 = vadd.f32 %v895_v21, %v164_v63  ;;  %v897_v23 = vpop.f32.mrb[9].mxu0 }
 0x167   :  { %v1377_v24 = vadd.f32 %v897_v23, %v168_v0  ;;  %v899_v25 = vpop.f32.mrb[10].mxu0 }
 0x168   :  { %v1378_v26 = vadd.f32 %v899_v25, %v164_v63  ;;  %v901_v27 = vpop.f32.mrb[11].mxu0 }
 0x169   :  { %v1280_v28 = vpack.c.bf16 %v1377_v24, %v1376_v22  ;;  %v1379_v29 = vadd.f32 %v901_v27, %v168_v0 }
 0x16b   :  { %1132 = vst [vmem:[%s1980_s3 + $0x30] sm:$0xff] %v1280_v28  ;;  %v1282_v30 = vpack.c.bf16 %v1379_v29, %v1378_v26 }
 0x16d   :  { %1134 = vst [vmem:[%s1980_s3 + $0x3c] sm:$0xff] %v1282_v30  ;;  %v905_v31 = vpop.f32.mrb[12].mxu0 }
 0x16e   :  { %v1380_v32 = vadd.f32 %v905_v31, %v164_v63  ;;  %v907_v33 = vpop.f32.mrb[13].mxu0 }
 0x16f   :  { %v1381_v34 = vadd.f32 %v907_v33, %v168_v0  ;;  %v909_v35 = vpop.f32.mrb[14].mxu0 }
 0x170   :  { %v1382_v36 = vadd.f32 %v909_v35, %v164_v63  ;;  %v911_v37 = vpop.f32.mrb[15].mxu0 }
 0x171   :  { %v1284_v38 = vpack.c.bf16 %v1381_v34, %v1380_v32  ;;  %v1383_v39 = vadd.f32 %v911_v37, %v168_v0 }
 0x173   :  { %1136 = vst [vmem:[%s1980_s3 + $0x48] sm:$0xff] %v1284_v38  ;;  %v1286_v40 = vpack.c.bf16 %v1383_v39, %v1382_v36 }
 0x175   :  { %1138 = vst [vmem:[%s1980_s3 + $0x54] sm:$0xff] %v1286_v40 }

</bundles_post_ra>
